<compile_context>
chip_gen: v7x
topology: tpu7x:2x2x1
jax: 0.10.0
libtpu: 0.0.40
codegen_flags: <defaults>
</compile_context>

<pallas_src>
import functools

import jax
import jax.numpy as jnp
from jax import lax
from jax.experimental import pallas as pl
from jax.experimental.pallas import tpu as pltpu

# ----------------------------- config ---------------------------------------
NUM_CLASSES = 4
GRAPH_X_DIM = 2
GRAPH_X_LAYER_SIZE = 32
LOG1P_GRAPH_X = True
BN_EPS = 1e-5


def _round_up(x, m):
    return ((x + m - 1) // m) * m


# ----------------------------- kernel ---------------------------------------
def _aux_readout_kernel(
    g_ref,      # (B, C)          graph features
    aux_ref,    # (B, D)          auxiliary features
    p_ref,      # (n_rows, H)     packed params slab (f32)
    out_ref,    # (B, C)          output logits
    *,
    log1p_graph_x: bool,
    C: int,
    D: int,
    H: int,
    w1a_row: int,
    bias_row: int,
    w2_row: int,
):
    g = g_ref[...].astype(jnp.float32)
    aux = aux_ref[...].astype(jnp.float32)

    if log1p_graph_x:
        aux = jnp.log1p(aux)

    # BatchNorm1d (training mode) stats are per-feature over axis 0, so they
    # decompose cleanly over the two concatenated segments -> no lane concat.
    def _bn_center_scale(x):
        m = jnp.mean(x, axis=0, keepdims=True)
        c = x - m
        v = jnp.mean(c * c, axis=0, keepdims=True)
        return c * lax.rsqrt(v + BN_EPS)          # rsqrt -> EUP slot (free here)

    ng = _bn_center_scale(g)      # (B, C)
    na = _bn_center_scale(aux)    # (B, D)

    # Static, 8-row-aligned slices of the packed parameter slab
    # (gamma/beta already folded into w1/b1).
    w1g = p_ref[0:C, :]                              # (C, H)
    w1a = p_ref[w1a_row:w1a_row + D, :]              # (D, H)
    b1 = p_ref[bias_row:bias_row + 1, :]             # (1, H)
    b2 = p_ref[bias_row + 1:bias_row + 2, 0:C]       # (1, C)
    w2t = p_ref[w2_row:w2_row + C, :]                # (C, H)  (Linear2 weight, transposed)

    # feed_forward: Linear -> ReLU -> (Dropout == identity) -> Linear
    h = (jnp.dot(ng, w1g, preferred_element_type=jnp.float32)
         + jnp.dot(na, w1a, preferred_element_type=jnp.float32)
         + b1)
    h = jnp.maximum(h, 0.0)

    # (B, H) x (C, H) contracting on H -> (B, C); lane-dense RHS load.
    out = lax.dot_general(
        h, w2t,
        dimension_numbers=(((1,), (1,)), ((), ())),
        preferred_element_type=jnp.float32) + b2
    out_ref[...] = out.astype(out_ref.dtype)


# ----------------------------- packing (call ONCE per param set) -------------
def pack_params(params, C, D, H):
    """Fold BN affine into Linear1 and pack all params into one f32 slab.

    Call this once when parameters change and reuse (slab, layout) across
    forward calls -- it is deliberately NOT part of the per-call path.
    """
    gamma = params["gamma"].astype(jnp.float32)      # (F,)
    beta = params["beta"].astype(jnp.float32)        # (F,)
    w1 = params["w1"].astype(jnp.float32)            # (F, H)
    b1 = params["b1"].astype(jnp.float32)            # (H,)
    w2 = params["w2"].astype(jnp.float32)            # (H, C)
    b2 = params["b2"].astype(jnp.float32)            # (C,)

    # Constant-fold:  (n*gamma + beta) @ w1 + b1 == n @ (gamma[:,None]*w1) + (beta @ w1 + b1)
    w1f = gamma[:, None] * w1                        # (F, H)
    b1f = beta @ w1 + b1                             # (H,)

    assert H >= C, "packing assumes hidden size >= num_classes"

    # 8-row sublane-tile-aligned segment offsets.
    w1a_row = _round_up(C, 8)
    bias_row = _round_up(w1a_row + D, 8)
    w2_row = _round_up(bias_row + 2, 8)
    n_rows = _round_up(w2_row + C, 8)

    slab = jnp.zeros((n_rows, H), jnp.float32)
    slab = slab.at[0:C, :].set(w1f[:C])                    # w1 rows for graph feats
    slab = slab.at[w1a_row:w1a_row + D, :].set(w1f[C:])    # w1 rows for aux feats
    slab = slab.at[bias_row, :].set(b1f)                   # fused bias 1
    slab = slab.at[bias_row + 1, 0:C].set(b2)              # bias 2 (lanes 0:C, rest zero)
    slab = slab.at[w2_row:w2_row + C, :].set(w2.T)         # Linear2 weight, transposed (C, H)

    layout = dict(w1a_row=w1a_row, bias_row=bias_row, w2_row=w2_row)
    return slab, layout


# ----------------------------- per-call wrapper -------------------------------
def auxiliary_readout(graph_features, auxiliary_features, slab, layout,
                      *, hidden_size, log1p_graph_x=LOG1P_GRAPH_X):
    """Pallas implementation of AuxiliaryReadout.forward.

    `slab`/`layout` come from `pack_params` (computed once, reused per call).
    Returns (out, graph_features), matching the PyTorch module.
    """
    B, C = graph_features.shape
    Bx, D = auxiliary_features.shape
    assert B == Bx, "every graph needs aux_features. Dimension mismatch."
    H = hidden_size

    kernel = functools.partial(
        _aux_readout_kernel,
        log1p_graph_x=log1p_graph_x, C=C, D=D, H=H,
        w1a_row=layout["w1a_row"],
        bias_row=layout["bias_row"],
        w2_row=layout["w2_row"])

    vmem = pl.BlockSpec(memory_space=pltpu.MemorySpace.VMEM)

    out = pl.pallas_call(
        kernel,
        out_shape=jax.ShapeDtypeStruct((B, C), jnp.float32),
        in_specs=[vmem, vmem, vmem],
        out_specs=vmem,
    )(graph_features, auxiliary_features, slab)

    return out, graph_features


# ----------------------------- params ---------------------------------------
def init_params(key, num_classes, graph_x_dim, layer_size):
    """Deterministic synthetic parameter init (shapes match nn.Module.__init__)."""
    F = num_classes + graph_x_dim
    k1, k2, k3, k4, k5, k6 = jax.random.split(key, 6)
    return {
        # BatchNorm1d(F): non-trivial gamma/beta so the folding is exercised
        "gamma": 1.0 + 0.1 * jax.random.normal(k5, (F,), jnp.float32),
        "beta": 0.1 * jax.random.normal(k6, (F,), jnp.float32),
        # Linear(F, layer_size): stored as (in, out) so kernel does x @ W
        "w1": (jax.random.normal(k1, (F, layer_size), jnp.float32)
               / jnp.sqrt(jnp.float32(F))),
        "b1": jax.random.normal(k2, (layer_size,), jnp.float32) * 0.01,
        # Linear(layer_size, num_classes)
        "w2": (jax.random.normal(k3, (layer_size, num_classes), jnp.float32)
               / jnp.sqrt(jnp.float32(layer_size))),
        "b2": jax.random.normal(k4, (num_classes,), jnp.float32) * 0.01,
    }


# ----------------------------- reference -------------------------------------
def reference(graph_features, auxiliary_features, params, *, log1p_graph_x):
    aux = jnp.log1p(auxiliary_features) if log1p_graph_x else auxiliary_features
    agg = jnp.concatenate([graph_features, aux], axis=1)
    mean = jnp.mean(agg, axis=0, keepdims=True)
    var = jnp.mean((agg - mean) ** 2, axis=0, keepdims=True)
    normed = (agg - mean) / jnp.sqrt(var + BN_EPS)
    normed = normed * params["gamma"][None, :] + params["beta"][None, :]
    h = jnp.maximum(normed @ params["w1"] + params["b1"][None, :], 0.0)
    out = h @ params["w2"] + params["b2"][None, :]
    return out, graph_features


# ----------------------------- main ------------------------------------------
if __name__ == "__main__":
    key = jax.random.PRNGKey(0)
    kp, kg, ka = jax.random.split(key, 3)

    B = 8
    params = init_params(kp, NUM_CLASSES, GRAPH_X_DIM, GRAPH_X_LAYER_SIZE)

    graph_features = jax.random.normal(kg, (B, NUM_CLASSES), jnp.float32)
    # aux features positive so log1p is well defined
    auxiliary_features = jax.random.uniform(
        ka, (B, GRAPH_X_DIM), jnp.float32, minval=0.0, maxval=5.0)

    # Pack parameters ONCE (hoisted out of the per-call path), then call.
    slab, layout = pack_params(params, NUM_CLASSES, GRAPH_X_DIM, GRAPH_X_LAYER_SIZE)
    slab = jax.block_until_ready(slab)

    out, passthrough = auxiliary_readout(
        graph_features, auxiliary_features, slab, layout,
        hidden_size=GRAPH_X_LAYER_SIZE, log1p_graph_x=LOG1P_GRAPH_X)
    out = jax.block_until_ready(out)

    ref_out, ref_pass = reference(
        graph_features, auxiliary_features, params, log1p_graph_x=LOG1P_GRAPH_X)

    assert jnp.allclose(out, ref_out, atol=1e-4, rtol=1e-4), "mismatch vs reference"
    assert jnp.array_equal(passthrough, graph_features)

    print("KERNEL_OK")
</pallas_src>

<mosaic_0001>
module attributes {stable_mosaic.version = 11 : i64} {
  func.func @_aux_readout_kernel(%arg0: memref<8x4xf32, #tpu.memory_space<vmem>>, %arg1: memref<8x2xf32, #tpu.memory_space<vmem>>, %arg2: memref<32x32xf32, #tpu.memory_space<vmem>>, %arg3: memref<8x4xf32, #tpu.memory_space<vmem>>) attributes {dimension_semantics = [], scalar_prefetch = 0 : i64, scratch_operands = 0 : i64, tpu.core_type = #tpu.core_type<tc>} {
    %c0 = arith.constant 0 : index
    %c0_0 = arith.constant 0 : index
    %0 = vector.load %arg0[%c0, %c0_0] : memref<8x4xf32, #tpu.memory_space<vmem>>, vector<8x4xf32>
    %c0_1 = arith.constant 0 : index
    %c0_2 = arith.constant 0 : index
    %1 = vector.load %arg1[%c0_1, %c0_2] : memref<8x2xf32, #tpu.memory_space<vmem>>, vector<8x2xf32>
    %2 = math.log1p %1 : vector<8x2xf32>
    %cst = arith.constant dense<0.000000e+00> : vector<4xf32>
    %3 = vector.multi_reduction <add>, %0, %cst [0] : vector<8x4xf32> to vector<4xf32>
    %4 = vector.shape_cast %3 : vector<4xf32> to vector<1x4xf32>
    %cst_3 = arith.constant 8.000000e+00 : f32
    %5 = vector.broadcast %cst_3 : f32 to vector<1x4xf32>
    %6 = arith.divf %4, %5 : vector<1x4xf32>
    %7 = vector.broadcast %6 : vector<1x4xf32> to vector<8x4xf32>
    %8 = arith.subf %0, %7 : vector<8x4xf32>
    %9 = arith.mulf %8, %8 : vector<8x4xf32>
    %cst_4 = arith.constant dense<0.000000e+00> : vector<4xf32>
    %10 = vector.multi_reduction <add>, %9, %cst_4 [0] : vector<8x4xf32> to vector<4xf32>
    %11 = vector.shape_cast %10 : vector<4xf32> to vector<1x4xf32>
    %cst_5 = arith.constant 8.000000e+00 : f32
    %12 = vector.broadcast %cst_5 : f32 to vector<1x4xf32>
    %13 = arith.divf %11, %12 : vector<1x4xf32>
    %cst_6 = arith.constant 9.99999974E-6 : f32
    %14 = vector.broadcast %cst_6 : f32 to vector<1x4xf32>
    %15 = arith.addf %13, %14 : vector<1x4xf32>
    %16 = math.rsqrt %15 : vector<1x4xf32>
    %17 = vector.broadcast %16 : vector<1x4xf32> to vector<8x4xf32>
    %18 = arith.mulf %8, %17 : vector<8x4xf32>
    %cst_7 = arith.constant dense<0.000000e+00> : vector<2xf32>
    %19 = vector.multi_reduction <add>, %2, %cst_7 [0] : vector<8x2xf32> to vector<2xf32>
    %20 = vector.shape_cast %19 : vector<2xf32> to vector<1x2xf32>
    %cst_8 = arith.constant 8.000000e+00 : f32
    %21 = vector.broadcast %cst_8 : f32 to vector<1x2xf32>
    %22 = arith.divf %20, %21 : vector<1x2xf32>
    %23 = vector.broadcast %22 : vector<1x2xf32> to vector<8x2xf32>
    %24 = arith.subf %2, %23 : vector<8x2xf32>
    %25 = arith.mulf %24, %24 : vector<8x2xf32>
    %cst_9 = arith.constant dense<0.000000e+00> : vector<2xf32>
    %26 = vector.multi_reduction <add>, %25, %cst_9 [0] : vector<8x2xf32> to vector<2xf32>
    %27 = vector.shape_cast %26 : vector<2xf32> to vector<1x2xf32>
    %cst_10 = arith.constant 8.000000e+00 : f32
    %28 = vector.broadcast %cst_10 : f32 to vector<1x2xf32>
    %29 = arith.divf %27, %28 : vector<1x2xf32>
    %cst_11 = arith.constant 9.99999974E-6 : f32
    %30 = vector.broadcast %cst_11 : f32 to vector<1x2xf32>
    %31 = arith.addf %29, %30 : vector<1x2xf32>
    %32 = math.rsqrt %31 : vector<1x2xf32>
    %33 = vector.broadcast %32 : vector<1x2xf32> to vector<8x2xf32>
    %34 = arith.mulf %24, %33 : vector<8x2xf32>
    %c0_12 = arith.constant 0 : index
    %c0_13 = arith.constant 0 : index
    %35 = vector.load %arg2[%c0_12, %c0_13] : memref<32x32xf32, #tpu.memory_space<vmem>>, vector<4x32xf32>
    %c8 = arith.constant 8 : index
    %c0_14 = arith.constant 0 : index
    %36 = vector.load %arg2[%c8, %c0_14] : memref<32x32xf32, #tpu.memory_space<vmem>>, vector<2x32xf32>
    %c16 = arith.constant 16 : index
    %c0_15 = arith.constant 0 : index
    %37 = vector.load %arg2[%c16, %c0_15] : memref<32x32xf32, #tpu.memory_space<vmem>>, vector<1x32xf32>
    %c17 = arith.constant 17 : index
    %c0_16 = arith.constant 0 : index
    %38 = vector.load %arg2[%c17, %c0_16] : memref<32x32xf32, #tpu.memory_space<vmem>>, vector<1x4xf32>
    %c24 = arith.constant 24 : index
    %c0_17 = arith.constant 0 : index
    %39 = vector.load %arg2[%c24, %c0_17] : memref<32x32xf32, #tpu.memory_space<vmem>>, vector<4x32xf32>
    %cst_18 = arith.constant dense<0.000000e+00> : vector<8x32xf32>
    %40 = tpu.matmul %18, %35, %cst_18 {dimension_numbers = #tpu.dot_dimension_numbers<[1], [0], [0], [1], [0, 0, 1, 1], [], []>} : vector<8x4xf32>, vector<4x32xf32>, vector<8x32xf32> -> vector<8x32xf32>
    %cst_19 = arith.constant dense<0.000000e+00> : vector<8x32xf32>
    %41 = tpu.matmul %34, %36, %cst_19 {dimension_numbers = #tpu.dot_dimension_numbers<[1], [0], [0], [1], [0, 0, 1, 1], [], []>} : vector<8x2xf32>, vector<2x32xf32>, vector<8x32xf32> -> vector<8x32xf32>
    %42 = arith.addf %40, %41 : vector<8x32xf32>
    %43 = vector.broadcast %37 : vector<1x32xf32> to vector<8x32xf32>
    %44 = arith.addf %42, %43 : vector<8x32xf32>
    %cst_20 = arith.constant 0.000000e+00 : f32
    %45 = vector.broadcast %cst_20 : f32 to vector<8x32xf32>
    %46 = arith.maximumf %44, %45 : vector<8x32xf32>
    %cst_21 = arith.constant dense<0.000000e+00> : vector<8x4xf32>
    %47 = tpu.matmul %46, %39, %cst_21 {dimension_numbers = #tpu.dot_dimension_numbers<[1], [1], [0], [0], [0, 0, 1, 0], [], []>} : vector<8x32xf32>, vector<4x32xf32>, vector<8x4xf32> -> vector<8x4xf32>
    %48 = vector.broadcast %38 : vector<1x4xf32> to vector<8x4xf32>
    %49 = arith.addf %47, %48 : vector<8x4xf32>
    %c0_22 = arith.constant 0 : index
    %c0_23 = arith.constant 0 : index
    %50 = vector.load %arg3[%c0_22, %c0_23] : memref<8x4xf32, #tpu.memory_space<vmem>>, vector<8x4xf32>
    tpu.vector_store %arg3[%c0_22, %c0_23], %49 {strides = array<i32>} : memref<8x4xf32, #tpu.memory_space<vmem>>, vector<8x4xf32>,
    return
  }
}

</mosaic_0001>

<bundles_post_ra>
// kernel: tpu_custom_call.1
= control target key start
LH: loop header
LB: loop body
LE: loop exit
PB: predicated region body
PF: predicated region fallthrough
CT: control target
= control target key end

     0   :  { %8 = vsyncpa [#allocation3], 0  ;;  %s400_s12 = smov [#allocation2]   ;;  %s462_s0 = inlined_call_operand.vmem [shape: f32[8,4], index: 0, kind: input, shape index: {}]   ;;  %s463_s1 = inlined_call_operand.vmem [shape: f32[8,2], index: 1, kind: input, shape index: {}]   ;;  %s464_s2 = inlined_call_operand.hbm [shape: f32[32,32], index: 2, kind: input, shape index: {}]   ;;  %s465_s3 = inlined_call_operand.vmem [shape: f32[8,4], index: 3, kind: output, shape index: {}]  }
   0x1   :  { %s18_s13 = sshll.u32 %s400_s12, 4  ;;  %s376_s16 = scalar_lea.hbm %s464_s2, 512  ;;  %s19_s13 = int_to_ptr.vmem [resolvable:$true] %s18_s13 }
   0x2   :  { %p377_p0 = scmp.ne.s32.totalorder %s464_s2, %s376_s16  ;;  %p380_p1 = scmp.lt.u32.totalorder %s376_s16, %s464_s2 }
   0x4   :  { %p382_p2 = pnand %p380_p1, %p377_p0 }
   0x6   :  { %385 = shalt.err (!%p382_p2)
}
   0x7   :  { %s386_s21 = scalar_lea.vmem %s19_s13, 512  ;;  %p391_p4 = scmp.lt.s32.totalorder %s19_s13, %s19_s13 }
   0x8   :  { %p387_p3 = scmp.ne.s32.totalorder %s19_s13, %s386_s21  ;;  %p392_p5 = scmp.lt.s32.totalorder %s386_s21, %s386_s21 }
   0xa   :  { %p393_p6 = por %p392_p5, %p391_p4 }
   0xc   :  { %p394_p7 = pnand %p393_p6, %p387_p3 }
   0xe   :  { %397 = shalt.err (!%p394_p7)
}
   0xf   :  { %s401_s22 = smov 128   ;;  %s402_s23 = smov 8  }
  0x10   :  { %24 = dma.hbm_to_vmem [thread:$0]  %s464_s2, 512, %s19_s13, [#allocation3], %s401_s22, %s401_s22, %s402_s23  }
  0x11   :  { %398 = dma.done.wait [#allocation3], 512  }
  0x12   :  { %399 = vsyncadd [#allocation3], 4294966784  ;;  %v403_v0 = vmov 0.0   ;;  %vm404_vm0 = vmmov 0   ;;  %vm169_vm1 = vcmask 1043456   ;;  %vm92_vm2 = vcmask 1041408  }
  0x13   :  { %355 = vmatprep.subr.mxu1 %v403_v0  ;;  %350 = vmatprep.subr.mxu0 %v403_v0  ;;  %vm39_vm3 = vcmask 31744   ;;  %v84_v1 = vld [vmem:[#allocation2] sm:$0xf]  ;;  %v85_v2 = vld [vmem:[#allocation2 + $0x8] sm:$0x3]  ;;  %vm62_vm5 = vcmask 15360  }
  0x14   :  { %357 = vmatprep.mubr.msk.f32.mxu1 %vm404_vm0, %v403_v0  ;;  %352 = vmatprep.mubr.msk.f32.mxu0 %vm404_vm0, %v403_v0  ;;  %v28_v3 = vld [vmem:[%s462_s0] sm:$0xff]  ;;  %v88_v55 = vld [vmem:[#allocation2 + $0x18] sm:$0xf]  ;;  %vm253_vm6 = vcmask 261120   ;;  %v340_v58 = vld [vmem:[#allocation2 + $0x10] ss:$0 sm:$0xff] }
  0x15   :  { %356 = vmatpush3.msk.msra.mxu1 %vm169_vm1, %v84_v1  ;;  %351 = vmatpush3.msk.msra.mxu0 %vm92_vm2, %v85_v2  ;;  %v40_v4 = vsel %vm39_vm3, %v28_v3, 0.0  ;;  %v29_v5 = vld [vmem:[%s463_s1] sm:$0xff]  ;;  %v341_v1 = vld [vmem:[#allocation2 + $0x11] ss:$0 sm:$0xff] }
  0x16   :  { %v41_v6 = vrot.slane %v40_v4, 4  ;;  %v30_v7 = vadd.f32 1.0, %v29_v5  ;;  %360 = vmatprep.subr.mxu0 %v403_v0  ;;  %v33_v9 = vmul.f32 -0.5, %v29_v5  ;;  %v36_v14 = vand.u32 2147483647, %v29_v5 }
  0x18   :  { %v42_v8 = vadd.f32 %v41_v6, %v40_v4  ;;  %370 = vlog2.f32 %v30_v7  ;;  %v34_v12 = vadd.f32 1.0, %v33_v9  ;;  %vm37_vm4 = vcmp.lt.f32.partialorder %v36_v14, 0.0004427343 }
  0x1a   :  { %v43_v10 = vrot.slane %v42_v8, 2  ;;  %v35_v16 = vmul.f32 %v34_v12, %v29_v5 }
  0x1c   :  { %v44_v11 = vadd.f32 %v43_v10, %v42_v8 }
  0x1e   :  { %v45_v13 = vrot.slane %v44_v11, 1 }
  0x20   :  { %v46_v15 = vadd.f32 %v45_v13, %v44_v11 }
  0x22   :  { %v371_v17 = vpop.eup %370  ;;  %v48_v18 = vmul.f32 0.125, %v46_v15 }
  0x23   :  { %v32_v19 = vmul.f32 0.6931472, %v371_v17 }
  0x24   :  { %v49_v20 = vsub.f32 %v28_v3, %v48_v18 }
  0x25   :  { %v38_v21 = vsel %vm37_vm4, %v35_v16, %v32_v19 }
  0x26   :  { %v50_v22 = vmul.f32 %v49_v20, %v49_v20  ;;  %v63_v23 = vsel %vm62_vm5, %v38_v21, 0.0 }
  0x27   :  { %v64_v24 = vrot.slane %v63_v23, 4 }
  0x28   :  { %v51_v25 = vsel %vm39_vm3, %v50_v22, 0.0 }
  0x29   :  { %v52_v26 = vrot.slane %v51_v25, 4  ;;  %v65_v27 = vadd.f32 %v64_v24, %v63_v23 }
  0x2b   :  { %v53_v28 = vadd.f32 %v52_v26, %v51_v25  ;;  %v66_v29 = vrot.slane %v65_v27, 2 }
  0x2d   :  { %v54_v30 = vrot.slane %v53_v28, 2  ;;  %v67_v31 = vadd.f32 %v66_v29, %v65_v27 }
  0x2f   :  { %v55_v32 = vadd.f32 %v54_v30, %v53_v28  ;;  %v68_v33 = vrot.slane %v67_v31, 1 }
  0x31   :  { %v56_v34 = vrot.slane %v55_v32, 1  ;;  %v69_v35 = vadd.f32 %v68_v33, %v67_v31 }
  0x33   :  { %v57_v36 = vadd.f32 %v56_v34, %v55_v32  ;;  %v70_v37 = vmul.f32 0.125, %v69_v35 }
  0x35   :  { %v58_v38 = vmul.f32 0.125, %v57_v36  ;;  %v71_v39 = vsub.f32 %v38_v21, %v70_v37 }
  0x37   :  { %v59_v40 = vadd.f32 1e-05, %v58_v38  ;;  %v72_v41 = vmul.f32 %v71_v39, %v71_v39 }
  0x39   :  { %372 = vrsqrt.f32 %v59_v40  ;;  %v73_v42 = vsel %vm62_vm5, %v72_v41, 0.0 }
  0x3a   :  { %v74_v43 = vrot.slane %v73_v42, 4 }
  0x3c   :  { %v75_v44 = vadd.f32 %v74_v43, %v73_v42 }
  0x3e   :  { %v76_v45 = vrot.slane %v75_v44, 2 }
  0x40   :  { %v77_v46 = vadd.f32 %v76_v45, %v75_v44 }
  0x42   :  { %v78_v47 = vrot.slane %v77_v46, 1 }
  0x43   :  { %v373_v48 = vpop.eup %372 }
  0x44   :  { %v61_v49 = vmul.f32 %v373_v48, %v49_v20  ;;  %v79_v50 = vadd.f32 %v78_v47, %v77_v46 }
  0x46   :  { %358 = vmatmul.mubr.msk.f32.vlgmr.msra.gmra.mrb[0].mxu1 %vm39_vm3, %v61_v49  ;;  %v80_v51 = vmul.f32 0.125, %v79_v50 }
  0x48   :  { %v81_v52 = vadd.f32 1e-05, %v80_v51 }
  0x4a   :  { %374 = vrsqrt.f32 %v81_v52 }
  0x54   :  { %v375_v53 = vpop.eup %374 }
  0x55   :  { %v83_v54 = vmul.f32 %v375_v53, %v71_v39 }
  0x57   :  { %353 = vmatmul.mubr.msk.f32.vlgmr.msra.gmra.mrb[0].mxu0 %vm62_vm5, %v83_v54 }
  0x58   :  { %362 = vmatprep.mubr.msk.f32.mxu0 %vm404_vm0, %v403_v0  ;;  %361 = vmatpush3.xpose.msk.msra.mxu0 %vm253_vm6, %v88_v55 }
 0x119   :  { %v239_v56 = vpop.f32.mrb[0].mxu1 }
 0x11a   :  { %v359_v57 = vpop.f32.mrb[1].mxu1 }
 0x12a   :  { %v162_v59 = vpop.f32.mrb[0].mxu0 }
 0x12b   :  { %v240_v60 = vadd.f32 %v239_v56, %v162_v59  ;;  %v354_v61 = vpop.f32.mrb[1].mxu0 }
 0x12d   :  { %v247_v62 = vadd.f32 %v340_v58, %v240_v60 }
 0x12f   :  { %v248_v63 = vmax.f32 %v247_v62, 0.0 }
 0x131   :  { %363 = vmatmul.mubr.msk.f32.vlgmr.msra.gmra.mrb[2].mxu0 %vm253_vm6, %v248_v63 }
 0x204   :  { %v326_v2 = vpop.f32.mrb[2].mxu0 }
 0x205   :  { %v327_v3 = vadd.f32 %v341_v1, %v326_v2  ;;  %v364_v4 = vpop.f32.mrb[3].mxu0 }
 0x207   :  { %330 = vst.msk [vmem:[%s465_s3] sm:$0xff] %vm39_vm3, %v327_v3 }
 0x208   :  { %335 = vsyncpa [#allocation3], 1 }

</bundles_post_ra>
